<compile_context>
chip_gen: v6e
topology: v6e:2x2x1
jax: 0.10.0
libtpu: 0.0.40
codegen_flags: <defaults>
</compile_context>

<pallas_src>
import numpy as np
import jax
import jax.numpy as jnp
from jax.experimental import pallas as pl
from jax.experimental.pallas import tpu as pltpu

BN_EPS = 1e-5
_VMEM_LIMIT = 32 * 1024 * 1024


def _round_up(x, m):
    return (x + m - 1) // m * m


# ----------------------------------------------------------------------------
# Pass 1: tiled matmul (conv) + per-tile BN partial sums
# grid = (num_m_tiles, num_k_tiles); M axis "parallel", K axis "arbitrary".
# ----------------------------------------------------------------------------
def _matmul_stats_kernel(p_ref, w_ref, y_ref, stats_ref, acc_ref):
    kk = pl.program_id(1)
    nk = pl.num_programs(1)

    @pl.when(kk == 0)
    def _():
        acc_ref[...] = jnp.zeros_like(acc_ref)

    # MXU matmul in bf16 (or f32), f32 accumulation.
    acc_ref[...] += jnp.dot(p_ref[...], w_ref[...],
                            preferred_element_type=jnp.float32)

    @pl.when(kk == nk - 1)
    def _():
        y = acc_ref[...]                                    # (TM, COUT_P) f32
        y_ref[...] = y                                      # lane-dense store
        col_sum = jnp.sum(y, axis=0, keepdims=True)         # (1, COUT_P)
        col_sumsq = jnp.sum(y * y, axis=0, keepdims=True)   # (1, COUT_P)
        pad = jnp.zeros((6, y.shape[1]), jnp.float32)
        stats_ref[...] = jnp.concatenate([col_sum, col_sumsq, pad], axis=0)[None]


# ----------------------------------------------------------------------------
# Pass 2: normalize + affine + ReLU, fused into a single scale/shift.
# ----------------------------------------------------------------------------
def _bn_relu_kernel(y_ref, scale_ref, shift_ref, o_ref):
    o_ref[...] = jnp.maximum(y_ref[...] * scale_ref[...] + shift_ref[...], 0.0)


def _im2col(x, kh, kw, stride, padding, dilation):
    """NCHW -> (N*OH*OW, Cin*KH*KW); column order matches OIHW weight reshape."""
    n, c, h, w = x.shape
    xp = jnp.pad(x, ((0, 0), (0, 0), (padding, padding), (padding, padding)))
    oh = (h + 2 * padding - dilation * (kh - 1) - 1) // stride + 1
    ow = (w + 2 * padding - dilation * (kw - 1) - 1) // stride + 1
    cols = []
    for i in range(kh):
        for j in range(kw):
            sl = xp[:, :,
                    i * dilation: i * dilation + stride * oh: stride,
                    j * dilation: j * dilation + stride * ow: stride]
            cols.append(sl)                                  # (N, C, OH, OW)
    patches = jnp.stack(cols, axis=0)                        # (KH*KW, N, C, OH, OW)
    patches = patches.transpose(1, 3, 4, 2, 0)               # (N, OH, OW, C, KH*KW)
    patches = patches.reshape(n * oh * ow, c * kh * kw)
    return patches, oh, ow


def basic_conv(x, weight, gamma, beta, *, stride=1, padding=0, dilation=1,
               groups=1, compute_dtype=jnp.bfloat16, tm=256,
               channels_last=False):
    """BasicConv forward: Conv2d(bias=False) + BatchNorm2d(train mode) + ReLU.

    x:      (N, Cin, H, W)       float32 NCHW
    weight: (Cout, Cin, KH, KW)  float32 OIHW
    gamma/beta: (Cout,)
    returns (N, Cout, OH, OW)  (or NHWC if channels_last=True, which avoids the
    final transpose for callers that can consume channels-last).
    """
    assert groups == 1, "TODO(synk): grouped conv not implemented"
    n, cin, _, _ = x.shape
    cout, cin_w, kh, kw = weight.shape
    assert cin == cin_w

    patches, oh, ow = _im2col(x, kh, kw, stride, padding, dilation)  # (M, K)
    m, k = patches.shape

    # --- lane / sublane friendly padding ------------------------------------
    cout_p = _round_up(cout, 128)
    k_p = _round_up(k, 128)
    if k_p <= 1024:
        tk = k_p
    else:
        tk = 512 if (k_p % 512 == 0) else 128
    tm = _round_up(min(tm, _round_up(m, 16)), 16)   # multiple of 16 (bf16 packing)
    m_p = _round_up(m, tm)
    num_m = m_p // tm
    num_k = k_p // tk

    p_pad = jnp.pad(patches, ((0, m_p - m), (0, k_p - k))).astype(compute_dtype)
    w_mat = weight.reshape(cout, k).T                                # (K, Cout)
    w_pad = jnp.pad(w_mat, ((0, k_p - k), (0, cout_p - cout))).astype(compute_dtype)

    # --- pass 1: conv matmul + BN partial statistics -------------------------
    y_full, stats = pl.pallas_call(
        _matmul_stats_kernel,
        out_shape=(jax.ShapeDtypeStruct((m_p, cout_p), jnp.float32),
                   jax.ShapeDtypeStruct((num_m, 8, cout_p), jnp.float32)),
        grid=(num_m, num_k),
        in_specs=[
            pl.BlockSpec((tm, tk), lambda i, kk: (i, kk)),
            pl.BlockSpec((tk, cout_p), lambda i, kk: (kk, 0)),
        ],
        out_specs=(
            pl.BlockSpec((tm, cout_p), lambda i, kk: (i, 0)),
            pl.BlockSpec((1, 8, cout_p), lambda i, kk: (i, 0, 0)),
        ),
        scratch_shapes=[pltpu.VMEM((tm, cout_p), jnp.float32)],
        compiler_params=pltpu.CompilerParams(
            dimension_semantics=("parallel", "arbitrary"),
            vmem_limit_bytes=_VMEM_LIMIT),
    )(p_pad, w_pad)

    # --- tiny glue: reduce partials, fold BN into scale/shift (f32) ----------
    col_sum = jnp.sum(stats[:, 0, :], axis=0)         # (Cout_p,)
    col_sumsq = jnp.sum(stats[:, 1, :], axis=0)
    inv_m = jnp.float32(1.0 / m)                      # true rows; padded rows are 0
    mean = col_sum * inv_m
    var = jnp.maximum(col_sumsq * inv_m - mean * mean, 0.0)   # clamp (one-pass var)
    inv_std = jax.lax.rsqrt(var + BN_EPS)
    gamma_p = jnp.pad(gamma.astype(jnp.float32), (0, cout_p - cout))
    beta_p = jnp.pad(beta.astype(jnp.float32), (0, cout_p - cout))
    scale = (gamma_p * inv_std).reshape(1, cout_p)
    shift = (beta_p - mean * (gamma_p * inv_std)).reshape(1, cout_p)

    # --- pass 2: normalize + affine + ReLU ------------------------------------
    out_flat = pl.pallas_call(
        _bn_relu_kernel,
        out_shape=jax.ShapeDtypeStruct((m_p, cout_p), jnp.float32),
        grid=(num_m,),
        in_specs=[
            pl.BlockSpec((tm, cout_p), lambda i: (i, 0)),
            pl.BlockSpec((1, cout_p), lambda i: (0, 0)),
            pl.BlockSpec((1, cout_p), lambda i: (0, 0)),
        ],
        out_specs=pl.BlockSpec((tm, cout_p), lambda i: (i, 0)),
        compiler_params=pltpu.CompilerParams(
            dimension_semantics=("parallel",),
            vmem_limit_bytes=_VMEM_LIMIT),
    )(y_full, scale, shift)

    out = out_flat[:m, :cout].reshape(n, oh, ow, cout)           # NHWC
    if channels_last:
        return out
    return out.transpose(0, 3, 1, 2)                             # NCHW (torch semantics)


def _reference(x, weight, gamma, beta, *, stride, padding, dilation):
    y = jax.lax.conv_general_dilated(
        x, weight,
        window_strides=(stride, stride),
        padding=[(padding, padding), (padding, padding)],
        rhs_dilation=(dilation, dilation),
        dimension_numbers=("NCHW", "OIHW", "NCHW"))
    mean = y.mean(axis=(0, 2, 3), keepdims=True)
    var = ((y - mean) ** 2).mean(axis=(0, 2, 3), keepdims=True)
    y = (y - mean) * jax.lax.rsqrt(var + BN_EPS)
    y = y * gamma.reshape(1, -1, 1, 1) + beta.reshape(1, -1, 1, 1)
    return jnp.maximum(y, 0.0)


if __name__ == "__main__":
    key = jax.random.PRNGKey(0)
    k_x, k_w, k_g, k_b = jax.random.split(key, 4)

    # BasicConv(in_planes=4, out_planes=8, kernel_size=3, stride=1, padding=1)
    N, Cin, H, W = 2, 4, 16, 16
    Cout, KH, KW = 8, 3, 3
    stride, padding, dilation = 1, 1, 1

    x = jax.random.normal(k_x, (N, Cin, H, W), dtype=jnp.float32)
    fan_in = Cin * KH * KW
    weight = jax.random.normal(k_w, (Cout, Cin, KH, KW), dtype=jnp.float32) / np.sqrt(fan_in)
    gamma = 1.0 + 0.1 * jax.random.normal(k_g, (Cout,), dtype=jnp.float32)
    beta = 0.1 * jax.random.normal(k_b, (Cout,), dtype=jnp.float32)

    ref = _reference(x, weight, gamma, beta,
                     stride=stride, padding=padding, dilation=dilation)

    # Default (bf16 MXU operands, f32 accumulate/epilogue).
    out_bf16 = basic_conv(x, weight, gamma, beta,
                          stride=stride, padding=padding, dilation=dilation,
                          compute_dtype=jnp.bfloat16)
    out_bf16 = jax.block_until_ready(out_bf16)
    np.testing.assert_allclose(np.asarray(out_bf16), np.asarray(ref),
                               rtol=3e-2, atol=3e-2)

    # Full-precision path for a tight numerical check.
    out_f32 = basic_conv(x, weight, gamma, beta,
                         stride=stride, padding=padding, dilation=dilation,
                         compute_dtype=jnp.float32)
    out_f32 = jax.block_until_ready(out_f32)
    np.testing.assert_allclose(np.asarray(out_f32), np.asarray(ref),
                               rtol=1e-3, atol=1e-3)

    print("KERNEL_OK")
</pallas_src>

<mosaic_0001>
module attributes {stable_mosaic.version = 11 : i64} {
  func.func @_matmul_stats_kernel(%arg0: i32, %arg1: i32, %arg2: memref<256x128xbf16, #tpu.memory_space<vmem>>, %arg3: memref<128x128xbf16, #tpu.memory_space<vmem>>, %arg4: memref<256x128xf32, #tpu.memory_space<vmem>>, %arg5: memref<1x8x128xf32, #tpu.memory_space<vmem>>, %arg6: memref<256x128xf32, #tpu.memory_space<vmem>>) attributes {dimension_semantics = [#tpu.dimension_semantics<parallel>, #tpu.dimension_semantics<arbitrary>], iteration_bounds = array<i64: 2, 1>, scalar_prefetch = 0 : i64, scratch_operands = 1 : i64, tpu.core_type = #tpu.core_type<tc>, window_params = [{transform_indices = @transform_0, window_bounds = array<i64: 256, 128>}, {transform_indices = @transform_1, window_bounds = array<i64: 128, 128>}, {transform_indices = @transform_2, window_bounds = array<i64: 256, 128>}, {transform_indices = @transform_3, window_bounds = array<i64: 1, 8, 128>}]} {
    %c0_i32 = arith.constant 0 : i32
    %0 = arith.cmpi eq, %arg1, %c0_i32 : i32
    %1 = arith.extui %0 : i1 to i32
    %c0_i32_0 = arith.constant 0 : i32
    %2 = arith.cmpi ne, %1, %c0_i32_0 : i32
    scf.if %2 {
      %cst_10 = arith.constant 0.000000e+00 : f32
      %12 = vector.broadcast %cst_10 : f32 to vector<256x128xf32>
      %c0_11 = arith.constant 0 : index
      %c0_12 = arith.constant 0 : index
      %13 = vector.load %arg6[%c0_11, %c0_12] : memref<256x128xf32, #tpu.memory_space<vmem>>, vector<256x128xf32>
      tpu.vector_store %arg6[%c0_11, %c0_12], %12 {strides = array<i32>} : memref<256x128xf32, #tpu.memory_space<vmem>>, vector<256x128xf32>,
    } else {
    }
    %c0 = arith.constant 0 : index
    %c0_1 = arith.constant 0 : index
    %3 = vector.load %arg6[%c0, %c0_1] : memref<256x128xf32, #tpu.memory_space<vmem>>, vector<256x128xf32>
    %c0_2 = arith.constant 0 : index
    %c0_3 = arith.constant 0 : index
    %4 = vector.load %arg2[%c0_2, %c0_3] : memref<256x128xbf16, #tpu.memory_space<vmem>>, vector<256x128xbf16>
    %c0_4 = arith.constant 0 : index
    %c0_5 = arith.constant 0 : index
    %5 = vector.load %arg3[%c0_4, %c0_5] : memref<128x128xbf16, #tpu.memory_space<vmem>>, vector<128x128xbf16>
    %cst = arith.constant dense<0.000000e+00> : vector<256x128xf32>
    %6 = tpu.matmul %4, %5, %cst {dimension_numbers = #tpu.dot_dimension_numbers<[1], [0], [0], [1], [0, 0, 1, 1], [], []>} : vector<256x128xbf16>, vector<128x128xbf16>, vector<256x128xf32> -> vector<256x128xf32>
    %7 = arith.addf %3, %6 : vector<256x128xf32>
    %c0_6 = arith.constant 0 : index
    %c0_7 = arith.constant 0 : index
    %8 = vector.load %arg6[%c0_6, %c0_7] : memref<256x128xf32, #tpu.memory_space<vmem>>, vector<256x128xf32>
    tpu.vector_store %arg6[%c0_6, %c0_7], %7 {strides = array<i32>} : memref<256x128xf32, #tpu.memory_space<vmem>>, vector<256x128xf32>,
    %c0_i32_8 = arith.constant 0 : i32
    %9 = arith.cmpi eq, %arg1, %c0_i32_8 : i32
    %10 = arith.extui %9 : i1 to i32
    %c0_i32_9 = arith.constant 0 : i32
    %11 = arith.cmpi ne, %10, %c0_i32_9 : i32
    scf.if %11 {
      %c0_10 = arith.constant 0 : index
      %c0_11 = arith.constant 0 : index
      %12 = vector.load %arg6[%c0_10, %c0_11] : memref<256x128xf32, #tpu.memory_space<vmem>>, vector<256x128xf32>
      %c0_12 = arith.constant 0 : index
      %c0_13 = arith.constant 0 : index
      %13 = vector.load %arg4[%c0_12, %c0_13] : memref<256x128xf32, #tpu.memory_space<vmem>>, vector<256x128xf32>
      tpu.vector_store %arg4[%c0_12, %c0_13], %12 {strides = array<i32>} : memref<256x128xf32, #tpu.memory_space<vmem>>, vector<256x128xf32>,
      %cst_14 = arith.constant dense<0.000000e+00> : vector<128xf32>
      %14 = vector.multi_reduction <add>, %12, %cst_14 [0] : vector<256x128xf32> to vector<128xf32>
      %15 = vector.shape_cast %14 : vector<128xf32> to vector<1x128xf32>
      %16 = arith.mulf %12, %12 : vector<256x128xf32>
      %cst_15 = arith.constant dense<0.000000e+00> : vector<128xf32>
      %17 = vector.multi_reduction <add>, %16, %cst_15 [0] : vector<256x128xf32> to vector<128xf32>
      %18 = vector.shape_cast %17 : vector<128xf32> to vector<1x128xf32>
      %cst_16 = arith.constant 0.000000e+00 : f32
      %19 = vector.broadcast %cst_16 : f32 to vector<6x128xf32>
      %20 = tpu.concatenate %15, %18, %19 in 0 : vector<1x128xf32>, vector<1x128xf32>, vector<6x128xf32> -> vector<8x128xf32>
      %21 = vector.shape_cast %20 : vector<8x128xf32> to vector<1x8x128xf32>
      %c0_17 = arith.constant 0 : index
      %c0_18 = arith.constant 0 : index
      %c0_19 = arith.constant 0 : index
      %22 = vector.load %arg5[%c0_17, %c0_18, %c0_19] : memref<1x8x128xf32, #tpu.memory_space<vmem>>, vector<1x8x128xf32>
      tpu.vector_store %arg5[%c0_17, %c0_18, %c0_19], %21 {strides = array<i32>} : memref<1x8x128xf32, #tpu.memory_space<vmem>>, vector<1x8x128xf32>,
    } else {
    }
    return
  }
  func.func @transform_0(%arg0: i32, %arg1: i32) -> (i32, i32) {
    %c0_i32 = arith.constant 0 : i32
    return %arg0, %arg1 : i32, i32
  }
  func.func @transform_1(%arg0: i32, %arg1: i32) -> (i32, i32) {
    %c0_i32 = arith.constant 0 : i32
    %c0_i32_0 = arith.constant 0 : i32
    return %arg1, %c0_i32 : i32, i32
  }
  func.func @transform_2(%arg0: i32, %arg1: i32) -> (i32, i32) {
    %c0_i32 = arith.constant 0 : i32
    %c0_i32_0 = arith.constant 0 : i32
    return %arg0, %c0_i32 : i32, i32
  }
  func.func @transform_3(%arg0: i32, %arg1: i32) -> (i32, i32, i32) {
    %c0_i32 = arith.constant 0 : i32
    %c0_i32_0 = arith.constant 0 : i32
    %c0_i32_1 = arith.constant 0 : i32
    return %arg0, %c0_i32, %c0_i32_0 : i32, i32, i32
  }
}

</mosaic_0001>

<bundles_post_ra>
// kernel: tpu_custom_call.1
= control target key start
LH: loop header
LB: loop body
LE: loop exit
PB: predicated region body
PF: predicated region fallthrough
CT: control target
= control target key end

     0   :  { %9 = vsyncpa [#allocation4], 0  ;;  %s1863_s0 = inlined_call_operand.hbm [shape: bf16[512,128], index: 0, kind: input, shape index: {}]   ;;  %s1864_s1 = inlined_call_operand.hbm [shape: bf16[128,128], index: 1, kind: input, shape index: {}]   ;;  %s1865_s2 = inlined_call_operand.hbm [shape: f32[512,128], index: 2, kind: output, shape index: {0}]   ;;  %s1866_s3 = inlined_call_operand.hbm [shape: f32[2,8,128], index: 3, kind: output, shape index: {1}]  }
   0x1   :  { %11 = vsyncpa [#allocation4 + $0x1], 0 }
   0x2   :  { %12 = vsyncpa [#allocation7], 0 }
   0x3   :  { %13 = vsyncpa [#allocation5], 0 }
   0x4   :  { %15 = vsyncpa [#allocation5 + $0x1], 0 }
   0x5   :  { %16 = vsyncpa [#allocation10], 0 }
   0x6   :  { %18 = vsyncpa [#allocation10 + $0x1], 0  ;;  %s1502_s12 = smov 0   ;;  %s1504_s13 = smov 0  }
   0x7   :  { %s1506_s14 = smov 0   ;;  %s1508_s15 = smov 0  }
   0x8   :  { %s1510_s16 = smov 0   ;;  %s1512_s17 = smov 0  }
   0x9 LB: > { %s1064_s18 = sadd.s32 4294967295, %s1472_s17   ;;  %s1065_s19 = sadd.s32 4294967294, %s1472_s17   ;;  %s1472_s17 = sphi %s1512_s17, %s24_s17   ;;  %s1468_s16 = sphi %s1510_s16, %s1888_s16   ;;  %s1464_s15 = sphi %s1508_s15, %s1887_s15   ;;  %s1460_s14 = sphi %s1506_s14, %s1886_s14   ;;  %s1456_s13 = sphi %s1504_s13, %s1885_s13   ;;  %s1452_s12 = sphi %s1502_s12, %s1884_s12  }
   0xa   : > { %p58_p0 = scmp.ne.s32.totalorder %s1456_s13, %s1452_s12  ;;  %p1536_p1 = scmp.eq.s32.totalorder %s1064_s18, 0 }
   0xb   : > { %p1540_p2 = scmp.eq.s32.totalorder %s1064_s18, 1  ;;  %p114_p3 = scmp.eq.s32.totalorder %s1065_s19, 1 }
   0xc   : > { %p1546_p4 = por %p1536_p1, %p58_p0  ;;  %p1066_p5 = scmp.ge.s32.totalorder %s1472_s17, 1 }
   0xd   : > { %p1551_p6 = por %p114_p3, %p58_p0  ;;  %p147_p7 = scmp.lt.s32.totalorder %s1472_s17, 3 }
   0xe   : > { %s1872_s22 = scalar_select %p1546_p4, 1, 0 }
   0xf   : > { %s1873_s23 = scalar_select %p1551_p6, 1, 0 }
  0x10   : > { %p1556_p8 = pnand %p1066_p5, %p147_p7  ;;  %s1474_s25 = smov [#allocation6]  }
  0x11   : > { %s162_s26 = sshll.u32 %s1474_s25, 4  ;;  %s36_s28 = sadd.s32 1, %s1468_s16  ;;  %s163_s26 = int_to_ptr.vmem [resolvable:$true] %s162_s26 }
  0x12   : > { %p1208_p9 = pneg %p1556_p8  ;;  %s1315_s29 = scalar_lea.vmem %s163_s26, 1024 }
  0x13   : > { %p1316_p13 = scmp.ne.s32.totalorder %s163_s26, %s1315_s29  ;;  %p1323_p5 = scmp.lt.s32.totalorder %s163_s26, %s163_s26 }
  0x14   : > { %p1565_p11 = pnand %p1208_p9, %p1536_p1  ;;  %p1324_p7 = scmp.lt.s32.totalorder %s1315_s29, %s1315_s29 }
  0x16   : > { %p1306_p12 = pneg %p1565_p11  ;;  %p1325_p6 = por %p1324_p7, %p1323_p5 }
  0x18   : > { %p1318_p0 = pnand %p1316_p13, %p1306_p12 }
  0x1a   : > { %p1319_p3 = pneg %p1318_p0 }
  0x1c   : > { %p1326_p4 = pnand %p1325_p6, %p1319_p3 }
  0x1e   : > { %1329 = shalt.err (!%p1326_p4)
}
  0x1f   : > { %s1868_s30 = smov 64   ;;  %s1869_s4 = smov 4  }
  0x20   : > { %1211 = dma.hbm_to_vmem [thread:$0]  (!%p1565_p11), %s1864_s1, 1024, %s163_s26, [#allocation7], %s1868_s30, %s1868_s30, %s1869_s4  }
  0x21   : > { %p38_p4 = scmp.ge.s32.totalorder %s36_s28, 2  ;;  %s45_s7 = sadd.s32 1, %s1460_s14 }
  0x22   : > { %p52_p6 = scmp.ne.s32.totalorder %s1460_s14, %s1456_s13  ;;  %p53_p9 = scmp.eq.s32.totalorder %s1472_s17, 0 }
  0x23   : > { %s1890_s28 = smov (%p38_p4, %s36_s28), 0  ;;  %p1224_p0 = scmp.lt.s32.totalorder %s1472_s17, 2 }
  0x24   : > { %p1586_p12 = por %p53_p9, %p52_p6  ;;  %p1592_p13 = por %p1540_p2, %p52_p6 }
  0x25   : > { %s40_s10 = ssub.s32 %s1468_s16, %s1890_s28  ;;  %s176_s11 = sand.u32 1, %s1460_s14  }
  0x26   : > { %p43_p11 = scmp.eq.s32.totalorder %s40_s10, 0  ;;  %s1069_s18 = sshll.u32 %s176_s11, 7 }
  0x27   : > { %s1108_s25 = sshll.u32 %s1468_s16, 11  ;;  %s180_s5 = scalar_lea.vmem [#allocation3], %s1069_s18 }
  0x28   : > { %s1601_s19 = scalar_select %p43_p11, %s1460_s14, %s45_s7  }
  0x29   : > { %s187_s29 = scalar_lea.hbm %s1863_s0, %s1108_s25  ;;  %s188_s6 = sshll.u32 %s180_s5, 4  ;;  %s189_s6 = int_to_ptr.vmem [resolvable:$true] %s188_s6 }
  0x2a   : > { %p1609_p2 = pnand %p1224_p0, %p1586_p12  ;;  %s177_s30 = scalar_lea.sflag [#allocation4], %s176_s11 }
  0x2b   : > { %s1343_s10 = scalar_lea.vmem %s189_s6, 2048  ;;  %s1477_s7 = smov [#allocation3]  }
  0x2c   : > { %p1332_p3 = pneg %p1609_p2  ;;  %p1344_p5 = scmp.ne.s32.totalorder %s189_s6, %s1343_s10 }
  0x2d   : > { %s1348_s4 = sshll.u32 %s1477_s7, 4  ;;  %s1349_s4 = int_to_ptr.vmem [resolvable:$false] %s1348_s4 }
  0x2e   : > { %p1346_p7 = pnand %p1344_p5, %p1332_p3  ;;  %s1350_s25 = scalar_lea.vmem %s1349_s4, 4096 }
  0x2f   : > { %p1351_p6 = scmp.lt.s32.totalorder %s189_s6, %s1349_s4  ;;  %p1352_p9 = scmp.lt.s32.totalorder %s1350_s25, %s1343_s10 }
  0x30   : > { %p1347_p4 = pneg %p1346_p7 }
  0x31   : > { %p1353_p11 = por %p1352_p9, %p1351_p6 }
  0x33   : > { %p1354_p10 = pnand %p1353_p11, %p1347_p4 }
  0x35   : > { %1357 = shalt.err (!%p1354_p10)
}
  0x36   : > { %s1879_s8 = smov 4   ;;  %s1880_s18 = smov 64  }
  0x37   : > { %1215 = dma.hbm_to_vmem [thread:$0]  (!%p1609_p2), %s187_s29, 2048, %s189_s6, %s177_s30, %s1880_s18, %s1880_s18, %s1879_s8  }
  0x38   : > { %200 = sbr.rel (%p1556_p8) target bundleno = 397 (0x18d), region = 28  ;;  %s1623_s11 = sand.u32 (!%p1556_p8), 1, %s1456_s13  }
  0x39   : > { %s1073_s4 = sshll.u32 (!%p1556_p8), %s1623_s11, 7  ;;  %s203_s26 = scalar_lea.sflag (!%p1556_p8), [#allocation4], %s1623_s11 }
  0x3a   : > { %s1627_s27 = scalar_lea.vmem (!%p1556_p8), [#allocation3], %s1073_s4  ;;  %p1881_p10 = scmp.ne.s32.totalorder (!%p1556_p8), %s1872_s22, 0 }
  0x3d   : > { %1435 = dma.done.wait (%p1881_p10), %s203_s26, 2048  }
  0x3e   : > { %1437 = vsyncadd (%p1881_p10), %s203_s26, 4294965248 }
  0x3f   : > { %1439 = dma.done.wait (%p1536_p1), [#allocation7], 1024  }
  0x40   : > { %1441 = vsyncadd (%p1536_p1), [#allocation7], 4294966272  ;;  %v1280_v0 = vld [vmem:[#allocation6 + $0x38] sm:$0xff]   ;;  %v1281_v1 = vld [vmem:[#allocation6 + $0x30] sm:$0xff]   ;;  %s1075_s20 = sshll.u32 %s1623_s11, 8  ;;  %s1109_s24 = sshll.u32 %s1464_s15, 12 }
  0x41   : > { %1134 = vmatprep.subr.bf16.mxu0 %v1280_v0  ;;  %1182 = vmatprep.subr.bf16.mxu1 %v1280_v0  ;;  %v1282_v2 = vld [vmem:[#allocation6 + $0x28] sm:$0xff]   ;;  %v1283_v3 = vld [vmem:[#allocation6 + $0x20] sm:$0xff]   ;;  %v1284_v5 = vld [vmem:[#allocation6 + $0x18] sm:$0xff]   ;;  %s1656_s22 = scalar_lea.vmem [#allocation8], %s1075_s20  ;;  %s1733_s6 = scalar_lea.hbm %s1865_s2, %s1109_s24 }
  0x42   : > { %1135 = vmatpush3.bf16.msra.mxu0 %v1280_v0  ;;  %1190 = vmatpush3.bf16.msra.mxu1 %v1280_v0  ;;  %v1288_v4 = vld [vmem:[%s1627_s27] sm:$0xff]   ;;  %v1285_v6 = vld [vmem:[#allocation6 + $0x10] sm:$0xff]   ;;  %v1286_v8 = vld [vmem:[#allocation6 + $0x8] sm:$0xff]   ;;  %s924_s30 = sshll.u32 %s1656_s22, 4  ;;  %s906_s21 = scalar_lea.sflag [#allocation5], %s1623_s11  ;;  %s1735_s30 = int_to_ptr.vmem [resolvable:$true] %s924_s30 }
  0x43   : > { %1136 = vmatprep.subr.bf16.mxu0 %v1281_v1  ;;  %1183 = vmatprep.subr.bf16.mxu1 %v1281_v1  ;;  %v1296_v7 = vld [vmem:[%s1627_s27 + $0x40] sm:$0xff]   ;;  %v1289_v10 = vld [vmem:[%s1627_s27 + $0x8] sm:$0xff]   ;;  %v1290_v12 = vld [vmem:[%s1627_s27 + $0x10] sm:$0xff]   ;;  %s1358_s10 = scalar_lea.vmem %s1735_s30, 4096  ;;  %s1478_s7 = smov [#allocation8]  }
  0x44   : > { %1150 = vmatprep.mubr.bf16.mxu0 %v1288_v4  ;;  %1166 = vmatprep.mubr.bf16.mxu1 %v1296_v7  ;;  %v1287_v9 = vld [vmem:[#allocation6] sm:$0xff]   ;;  %v1297_v11 = vld [vmem:[%s1627_s27 + $0x48] sm:$0xff]   ;;  %v1298_v13 = vld [vmem:[%s1627_s27 + $0x50] sm:$0xff]   ;;  %p1359_p1 = scmp.ne.s32.totalorder %s1735_s30, %s1358_s10  ;;  %s1362_s25 = sshll.u32 %s1478_s7, 4  ;;  %s1363_s25 = int_to_ptr.vmem [resolvable:$false] %s1362_s25 }
  0x45   : > { %v1291_v14 = vld [vmem:[%s1627_s27 + $0x18] sm:$0xff]   ;;  %v1292_v16 = vld [vmem:[%s1627_s27 + $0x20] sm:$0xff]   ;;  %v1293_v18 = vld [vmem:[%s1627_s27 + $0x28] sm:$0xff]   ;;  %s1364_s8 = scalar_lea.vmem %s1363_s25, 8192  ;;  %p1365_p0 = scmp.lt.s32.totalorder %s1735_s30, %s1363_s25 }
  0x46   : > { %1137 = vmatpush3.bf16.msra.mxu0 %v1281_v1  ;;  %1191 = vmatpush3.bf16.msra.mxu1 %v1281_v1  ;;  %v1299_v15 = vld [vmem:[%s1627_s27 + $0x58] sm:$0xff]   ;;  %v1300_v17 = vld [vmem:[%s1627_s27 + $0x60] sm:$0xff]   ;;  %v1301_v19 = vld [vmem:[%s1627_s27 + $0x68] sm:$0xff]   ;;  %p1360_p8 = pnand %p1359_p1, %p1592_p13  ;;  %p1366_p2 = scmp.lt.s32.totalorder %s1364_s8, %s1358_s10 }
  0x47   : > { %1138 = vmatprep.subr.bf16.mxu0 %v1282_v2  ;;  %1184 = vmatprep.subr.bf16.mxu1 %v1282_v2  ;;  %v1294_v20 = vld [vmem:[%s1627_s27 + $0x30] sm:$0xff]   ;;  %v1295_v22 = vld [vmem:[%s1627_s27 + $0x38] sm:$0xff]  }
  0x48   : > { %v1302_v21 = vld [vmem:[%s1627_s27 + $0x70] sm:$0xff]   ;;  %v1303_v23 = vld [vmem:[%s1627_s27 + $0x78] sm:$0xff]   ;;  %p1361_p12 = pneg %p1360_p8  ;;  %p1367_p3 = por %p1366_p2, %p1365_p0 }
  0x4a   : > { %1139 = vmatpush3.bf16.msra.mxu0 %v1282_v2  ;;  %1192 = vmatpush3.bf16.msra.mxu1 %v1282_v2  ;;  %p1368_p5 = pnand %p1367_p3, %p1361_p12 }
  0x4b   : > { %1140 = vmatprep.subr.bf16.mxu0 %v1283_v3  ;;  %1185 = vmatprep.subr.bf16.mxu1 %v1283_v3 }
  0x4e   : > { %1141 = vmatpush3.bf16.msra.mxu0 %v1283_v3  ;;  %1193 = vmatpush3.bf16.msra.mxu1 %v1283_v3 }
  0x4f   : > { %1142 = vmatprep.subr.bf16.mxu0 %v1284_v5  ;;  %1186 = vmatprep.subr.bf16.mxu1 %v1284_v5 }
  0x52   : > { %1143 = vmatpush3.bf16.msra.mxu0 %v1284_v5  ;;  %1194 = vmatpush3.bf16.msra.mxu1 %v1284_v5 }
  0x53   : > { %1144 = vmatprep.subr.bf16.mxu0 %v1285_v6  ;;  %1187 = vmatprep.subr.bf16.mxu1 %v1285_v6 }
  0x56   : > { %1145 = vmatpush3.bf16.msra.mxu0 %v1285_v6  ;;  %1195 = vmatpush3.bf16.msra.mxu1 %v1285_v6 }
  0x57   : > { %1146 = vmatprep.subr.bf16.mxu0 %v1286_v8  ;;  %1188 = vmatprep.subr.bf16.mxu1 %v1286_v8 }
  0x5a   : > { %1147 = vmatpush3.bf16.msra.mxu0 %v1286_v8  ;;  %1196 = vmatpush3.bf16.msra.mxu1 %v1286_v8 }
  0x5b   : > { %1148 = vmatprep.subr.bf16.mxu0 %v1287_v9  ;;  %1189 = vmatprep.subr.bf16.mxu1 %v1287_v9 }
  0x5e   : > { %1149 = vmatpush3.bf16.msra.mxu0 %v1287_v9  ;;  %1197 = vmatpush3.bf16.msra.mxu1 %v1287_v9 }
  0x61   : > { %1151 = vmatmul.mubr.bf16.vlgmr.msra.gmra.mxu0 %v1289_v10  ;;  %1167 = vmatmul.mubr.bf16.vlgmr.msra.gmra.mxu1 %v1297_v11 }
  0x62   : > { %1154 = vmatprep.mubr.bf16.mxu0 %v1290_v12  ;;  %1170 = vmatprep.mubr.bf16.mxu1 %v1298_v13 }
  0x69   : > { %1155 = vmatmul.mubr.bf16.gmra.mxu0 %v1291_v14  ;;  %1171 = vmatmul.mubr.bf16.gmra.mxu1 %v1299_v15 }
  0x6a   : > { %1158 = vmatprep.mubr.bf16.mxu0 %v1292_v16  ;;  %1174 = vmatprep.mubr.bf16.mxu1 %v1300_v17 }
  0x71   : > { %1159 = vmatmul.mubr.bf16.gmra.mxu0 %v1293_v18  ;;  %1175 = vmatmul.mubr.bf16.gmra.mxu1 %v1301_v19 }
  0x72   : > { %1162 = vmatprep.mubr.bf16.mxu0 %v1294_v20  ;;  %1178 = vmatprep.mubr.bf16.mxu1 %v1302_v21 }
  0x79   : > { %1163 = vmatmul.mubr.bf16.gmra.mxu0 %v1295_v22  ;;  %1179 = vmatmul.mubr.bf16.gmra.mxu1 %v1303_v23 }
 0x121   : > { %v1152_v24 = vpop.f32.mrf.mxu0  ;;  %v1654_v25 = vpop.f32.mrf.mxu1 }
 0x122   : > { %764 = vst [vmem:[%s1656_s22 + $0x10] sm:$0xff] %v1152_v24  ;;  %780 = vst [vmem:[%s1656_s22 + $0x90] sm:$0xff] %v1654_v25  ;;  %v833_v37 = vmul.f32 %v1152_v24, %v1152_v24 }
 0x123   : > { %v536_v26 = vpop.f32.mrf.mxu0  ;;  %v1661_v27 = vpop.f32.mrf.mxu1 }
 0x124   : > { %762 = vst [vmem:[%s1656_s22] sm:$0xff] %v536_v26  ;;  %778 = vst [vmem:[%s1656_s22 + $0x80] sm:$0xff] %v1661_v27  ;;  %v831_v32 = vmul.f32 %v536_v26, %v536_v26 }
 0x125   : > { %v1153_v28 = vpop.f32.mrf.mxu0  ;;  %v1666_v29 = vpop.f32.mrf.mxu1 }
 0x126   : > { %765 = vst [vmem:[%s1656_s22 + $0x18] sm:$0xff] %v1153_v28  ;;  %781 = vst [vmem:[%s1656_s22 + $0x98] sm:$0xff] %v1666_v29  ;;  %v834_v42 = vmul.f32 %v1153_v28, %v1153_v28 }
 0x127   : > { %v539_v30 = vpop.f32.mrf.mxu0  ;;  %v1671_v31 = vpop.f32.mrf.mxu1 }
 0x128   : > { %763 = vst [vmem:[%s1656_s22 + $0x8] sm:$0xff] %v539_v30  ;;  %v794_v33 = vadd.f32 %v539_v30, %v536_v26  ;;  %v832_v34 = vmul.f32 %v539_v30, %v539_v30  ;;  %779 = vst [vmem:[%s1656_s22 + $0x88] sm:$0xff] %v1671_v31 }
 0x129   : > { %v1156_v35 = vpop.f32.mrf.mxu0  ;;  %v1676_v36 = vpop.f32.mrf.mxu1 }
 0x12a   : > { %v795_v38 = vadd.f32 %v1152_v24, %v794_v33  ;;  %v863_v39 = vadd.f32 %v832_v34, %v831_v32  ;;  %768 = vst [vmem:[%s1656_s22 + $0x30] sm:$0xff] %v1156_v35  ;;  %784 = vst [vmem:[%s1656_s22 + $0xb0] sm:$0xff] %v1676_v36  ;;  %v837_v57 = vmul.f32 %v1156_v35, %v1156_v35 }
 0x12b   : > { %v552_v40 = vpop.f32.mrf.mxu0  ;;  %v1681_v41 = vpop.f32.mrf.mxu1 }
 0x12c   : > { %v864_v43 = vadd.f32 %v863_v39, %v833_v37  ;;  %766 = vst [vmem:[%s1656_s22 + $0x20] sm:$0xff] %v552_v40  ;;  %v796_v44 = vadd.f32 %v1153_v28, %v795_v38  ;;  %782 = vst [vmem:[%s1656_s22 + $0xa0] sm:$0xff] %v1681_v41  ;;  %v835_v48 = vmul.f32 %v552_v40, %v552_v40 }
 0x12d   : > { %v1157_v45 = vpop.f32.mrf.mxu0  ;;  %v1686_v46 = vpop.f32.mrf.mxu1 }
 0x12e   : > { %v797_v47 = vadd.f32 %v796_v44, %v552_v40  ;;  %v865_v49 = vadd.f32 %v864_v43, %v834_v42  ;;  %769 = vst [vmem:[%s1656_s22 + $0x38] sm:$0xff] %v1157_v45  ;;  %785 = vst [vmem:[%s1656_s22 + $0xb8] sm:$0xff] %v1686_v46  ;;  %v838_v62 = vmul.f32 %v1157_v45, %v1157_v45 }
 0x12f   : > { %v555_v50 = vpop.f32.mrf.mxu0  ;;  %v1691_v51 = vpop.f32.mrf.mxu1 }
 0x130   : > { %v866_v52 = vadd.f32 %v865_v49, %v835_v48  ;;  %767 = vst [vmem:[%s1656_s22 + $0x28] sm:$0xff] %v555_v50  ;;  %v798_v53 = vadd.f32 %v797_v47, %v555_v50  ;;  %v836_v54 = vmul.f32 %v555_v50, %v555_v50  ;;  %783 = vst [vmem:[%s1656_s22 + $0xa8] sm:$0xff] %v1691_v51 }
 0x131   : > { %v1160_v55 = vpop.f32.mrf.mxu0  ;;  %v1696_v56 = vpop.f32.mrf.mxu1 }
 0x132   : > { %v799_v58 = vadd.f32 %v1156_v35, %v798_v53  ;;  %v867_v59 = vadd.f32 %v866_v52, %v836_v54  ;;  %772 = vst [vmem:[%s1656_s22 + $0x50] sm:$0xff] %v1160_v55  ;;  %788 = vst [vmem:[%s1656_s22 + $0xd0] sm:$0xff] %v1696_v56  ;;  %v841_v13 = vmul.f32 %v1160_v55, %v1160_v55 }
 0x133   : > { %v568_v60 = vpop.f32.mrf.mxu0  ;;  %v1701_v61 = vpop.f32.mrf.mxu1 }
 0x134   : > { %v868_v63 = vadd.f32 %v867_v59, %v837_v57  ;;  %770 = vst [vmem:[%s1656_s22 + $0x40] sm:$0xff] %v568_v60  ;;  %v800_v0 = vadd.f32 %v1157_v45, %v799_v58  ;;  %786 = vst [vmem:[%s1656_s22 + $0xc0] sm:$0xff] %v1701_v61  ;;  %v839_v4 = vmul.f32 %v568_v60, %v568_v60 }
 0x135   : > { %v1161_v1 = vpop.f32.mrf.mxu0  ;;  %v1706_v2 = vpop.f32.mrf.mxu1 }
 0x136   : > { %v801_v3 = vadd.f32 %v800_v0, %v568_v60  ;;  %v869_v5 = vadd.f32 %v868_v63, %v838_v62  ;;  %773 = vst [vmem:[%s1656_s22 + $0x58] sm:$0xff] %v1161_v1  ;;  %789 = vst [vmem:[%s1656_s22 + $0xd8] sm:$0xff] %v1706_v2  ;;  %v842_v18 = vmul.f32 %v1161_v1, %v1161_v1 }
 0x137   : > { %v571_v6 = vpop.f32.mrf.mxu0  ;;  %v1711_v7 = vpop.f32.mrf.mxu1 }
 0x138   : > { %v870_v8 = vadd.f32 %v869_v5, %v839_v4  ;;  %771 = vst [vmem:[%s1656_s22 + $0x48] sm:$0xff] %v571_v6  ;;  %v802_v9 = vadd.f32 %v801_v3, %v571_v6  ;;  %v840_v10 = vmul.f32 %v571_v6, %v571_v6  ;;  %787 = vst [vmem:[%s1656_s22 + $0xc8] sm:$0xff] %v1711_v7 }
 0x139   : > { %v1164_v11 = vpop.f32.mrf.mxu0  ;;  %v1716_v12 = vpop.f32.mrf.mxu1 }
 0x13a   : > { %v803_v14 = vadd.f32 %v1160_v55, %v802_v9  ;;  %v871_v15 = vadd.f32 %v870_v8, %v840_v10  ;;  %776 = vst [vmem:[%s1656_s22 + $0x70] sm:$0xff] %v1164_v11  ;;  %792 = vst [vmem:[%s1656_s22 + $0xf0] sm:$0xff] %v1716_v12 }
 0x13b   : > { %v584_v16 = vpop.f32.mrf.mxu0  ;;  %v1723_v17 = vpop.f32.mrf.mxu1 }
 0x13c   : > { %v872_v19 = vadd.f32 %v871_v15, %v841_v13  ;;  %774 = vst [vmem:[%s1656_s22 + $0x60] sm:$0xff] %v584_v16  ;;  %v804_v20 = vadd.f32 %v1161_v1, %v803_v14  ;;  %790 = vst [vmem:[%s1656_s22 + $0xe0] sm:$0xff] %v1723_v17  ;;  %v843_v24 = vmul.f32 %v584_v16, %v584_v16 }
 0x13d   : > { %v1165_v21 = vpop.f32.mrf.mxu0  ;;  %v1728_v22 = vpop.f32.mrf.mxu1 }
 0x13e   : > { %v805_v23 = vadd.f32 %v804_v20, %v584_v16  ;;  %v873_v26 = vadd.f32 %v872_v19, %v842_v18  ;;  %777 = vst [vmem:[%s1656_s22 + $0x78] sm:$0xff] %v1165_v21  ;;  %793 = vst [vmem:[%s1656_s22 + $0xf8] sm:$0xff] %v1728_v22 }
 0x13f   : > { %v587_v28 = vpop.f32.mrf.mxu0  ;;  %v1740_v30 = vpop.f32.mrf.mxu1 }
 0x140   : > { %v874_v32 = vadd.f32 %v873_v26, %v843_v24  ;;  %775 = vst [vmem:[%s1656_s22 + $0x68] sm:$0xff] %v587_v28  ;;  %v806_v33 = vadd.f32 %v805_v23, %v587_v28  ;;  %v844_v34 = vmul.f32 %v587_v28, %v587_v28  ;;  %791 = vst [vmem:[%s1656_s22 + $0xe8] sm:$0xff] %v1740_v30 }
 0x141   : > { %1371 = shalt.err (!%p1368_p5)
}
 0x142   : > { %s1372_s18 = scalar_lea.hbm %s1733_s6, 4096  ;;  %s1376_s27 = scalar_lea.hbm %s1865_s2, 8192 }
 0x143   : > { %p1373_p7 = scmp.ne.s32.totalorder %s1733_s6, %s1372_s18  ;;  %p1377_p9 = scmp.lt.s32.totalorder %s1733_s6, %s1865_s2 }
 0x144   : > { %p1378_p11 = scmp.lt.s32.totalorder %s1376_s27, %s1372_s18 }
 0x145   : > { %p1374_p4 = pnand %p1373_p7, %p1592_p13 }
 0x146   : > { %p1379_p10 = por %p1378_p11, %p1377_p9 }
 0x147   : > { %p1375_p6 = pneg %p1374_p4 }
 0x149   : > { %p1380_p1 = pnand %p1379_p10, %p1375_p6 }
 0x14b   : > { %1383 = shalt.err (!%p1380_p1)
}
 0x14c   : > { %s1479_s24 = smov 128   ;;  %s1480_s29 = smov 8   ;;  %v845_v35 = vmul.f32 %v1164_v11, %v1164_v11  ;;  %v807_v37 = vadd.f32 %v1164_v11, %v806_v33  ;;  %v875_v38 = vadd.f32 %v874_v32, %v844_v34  ;;  %v846_v39 = vmul.f32 %v1165_v21, %v1165_v21 }
 0x14d   : > { %1204 = dma.vmem_to_hbm [thread:$0]  (%p1592_p13), %s1735_s30, 4096, %s1733_s6, %s906_s21, %s1479_s24, %s1479_s24, %s1480_s29   ;;  %v847_v43 = vmul.f32 %v1661_v27, %v1661_v27  ;;  %v848_v48 = vmul.f32 %v1671_v31, %v1671_v31  ;;  %v849_v50 = vmul.f32 %v1654_v25, %v1654_v25  ;;  %v850_v54 = vmul.f32 %v1666_v29, %v1666_v29 }
 0x14e   : > { %v808_v40 = vadd.f32 %v1165_v21, %v807_v37  ;;  %v876_v42 = vadd.f32 %v875_v38, %v845_v35  ;;  %v851_v58 = vmul.f32 %v1681_v41, %v1681_v41  ;;  %v852_v62 = vmul.f32 %v1691_v51, %v1691_v51  ;;  %s1076_s30 = sshll.u32 %s1623_s11, 3  ;;  %s1105_s5 = sshll.u32 %s1464_s15, 7 }
 0x14f   : > { %v855_v4 = vmul.f32 %v1701_v61, %v1701_v61  ;;  %v856_v8 = vmul.f32 %v1711_v7, %v1711_v7  ;;  %v859_v14 = vmul.f32 %v1723_v17, %v1723_v17  ;;  %v861_v18 = vmul.f32 %v1716_v12, %v1716_v12  ;;  %s237_s6 = scalar_lea.vmem [#allocation9], %s1076_s30  ;;  %s1821_s25 = scalar_lea.hbm %s1866_s3, %s1105_s5 }
 0x150   : > { %v877_v44 = vadd.f32 %v876_v42, %v846_v39  ;;  %v809_v45 = vadd.f32 %v808_v40, %v1661_v27  ;;  %vm900_vm0 = vcmask 1040384   ;;  %s940_s21 = sshll.u32 %s237_s6, 4  ;;  %vm902_vm1 = vcmask 1041408   ;;  %s911_s8 = scalar_lea.sflag [#allocation10], %s1623_s11  ;;  %s941_s21 = int_to_ptr.vmem [resolvable:$true] %s940_s21 }
 0x151   : > { %s1384_s18 = scalar_lea.vmem %s941_s21, 128  ;;  %s1481_s15 = smov [#allocation9]  }
 0x152   : > { %v810_v47 = vadd.f32 %v809_v45, %v1671_v31  ;;  %v878_v49 = vadd.f32 %v877_v44, %v847_v43  ;;  %p1385_p8 = scmp.ne.s32.totalorder %s941_s21, %s1384_s18  ;;  %s1388_s4 = sshll.u32 %s1481_s15, 4  ;;  %s1389_s4 = int_to_ptr.vmem [resolvable:$false] %s1388_s4 }
 0x153   : > { %s1390_s26 = scalar_lea.vmem %s1389_s4, 256  ;;  %p1391_p2 = scmp.lt.s32.totalorder %s941_s21, %s1389_s4 }
 0x154   : > { %v811_v52 = vadd.f32 %v1654_v25, %v810_v47  ;;  %v879_v53 = vadd.f32 %v878_v49, %v848_v48  ;;  %v853_v25 = vmul.f32 %v1676_v36, %v1676_v36  ;;  %p1386_p12 = pnand %p1385_p8, %p1592_p13  ;;  %p1392_p3 = scmp.lt.s32.totalorder %s1390_s26, %s1384_s18 }
 0x156   : > { %v880_v55 = vadd.f32 %v879_v53, %v849_v50  ;;  %v812_v57 = vadd.f32 %v1666_v29, %v811_v52  ;;  %v854_v29 = vmul.f32 %v1686_v46, %v1686_v46  ;;  %p1387_p0 = pneg %p1386_p12  ;;  %p1393_p5 = por %p1392_p3, %p1391_p2 }
 0x158   : > { %v813_v27 = vadd.f32 %v812_v57, %v1681_v41  ;;  %v881_v59 = vadd.f32 %v880_v55, %v850_v54  ;;  %p1394_p7 = pnand %p1393_p5, %p1387_p0 }
 0x15a   : > { %v882_v31 = vadd.f32 %v881_v59, %v851_v58  ;;  %v814_v60 = vadd.f32 %v813_v27, %v1691_v51 }
 0x15c   : > { %v815_v63 = vadd.f32 %v1676_v36, %v814_v60  ;;  %v883_v0 = vadd.f32 %v882_v31, %v852_v62  ;;  %v857_v36 = vmul.f32 %v1696_v56, %v1696_v56 }
 0x15e   : > { %v884_v1 = vadd.f32 %v883_v0, %v853_v25  ;;  %v816_v3 = vadd.f32 %v1686_v46, %v815_v63  ;;  %v858_v46 = vmul.f32 %v1706_v2, %v1706_v2 }
 0x160   : > { %v817_v41 = vadd.f32 %v816_v3, %v1701_v61  ;;  %v885_v5 = vadd.f32 %v884_v1, %v854_v29 }
 0x162   : > { %v886_v6 = vadd.f32 %v885_v5, %v855_v4  ;;  %v818_v51 = vadd.f32 %v817_v41, %v1711_v7 }
 0x164   : > { %v819_v9 = vadd.f32 %v1696_v56, %v818_v51  ;;  %v887_v10 = vadd.f32 %v886_v6, %v856_v8  ;;  %v860_v56 = vmul.f32 %v1740_v30, %v1740_v30 }
 0x166   : > { %v888_v11 = vadd.f32 %v887_v10, %v857_v36  ;;  %v820_v13 = vadd.f32 %v1706_v2, %v819_v9  ;;  %v862_v2 = vmul.f32 %v1728_v22, %v1728_v22 }
 0x168   : > { %v821_v61 = vadd.f32 %v820_v13, %v1723_v17  ;;  %v889_v15 = vadd.f32 %v888_v11, %v858_v46 }
 0x16a   : > { %v890_v7 = vadd.f32 %v889_v15, %v859_v14  ;;  %v822_v16 = vadd.f32 %v821_v61, %v1740_v30 }
 0x16c   : > { %v823_v19 = vadd.f32 %v1716_v12, %v822_v16  ;;  %v891_v20 = vadd.f32 %v890_v7, %v860_v56 }
 0x16e   : > { %v824_v17 = vadd.f32 %v1728_v22, %v823_v19  ;;  %v892_v21 = vadd.f32 %v891_v20, %v861_v18 }
 0x170   : > { %v825_v23 = vrot.slane %v824_v17, 4  ;;  %v893_v24 = vadd.f32 %v892_v21, %v862_v2 }
 0x172   : > { %v826_v26 = vadd.f32 %v825_v23, %v824_v17  ;;  %v894_v28 = vrot.slane %v893_v24, 4 }
 0x174   : > { %v827_v32 = vrot.slane %v826_v26, 2  ;;  %v895_v33 = vadd.f32 %v894_v28, %v893_v24 }
 0x176   : > { %v828_v30 = vadd.f32 %v827_v32, %v826_v26  ;;  %v896_v34 = vrot.slane %v895_v33, 2 }
 0x178   : > { %v829_v35 = vrot.slane %v828_v30, 1  ;;  %v897_v12 = vadd.f32 %v896_v34, %v895_v33 }
 0x17a   : > { %v898_v37 = vrot.slane %v897_v12, 1  ;;  %v830_v22 = vadd.f32 %v829_v35, %v828_v30 }
 0x17c   : > { %v899_v38 = vadd.f32 %v898_v37, %v897_v12 }
 0x17e   : > { %v901_v39 = vsel %vm900_vm0, %v830_v22, %v899_v38 }
 0x17f   : > { %v903_v40 = vsel %vm902_vm1, %v901_v39, 0.0 }
 0x180   : > { %904 = vst [vmem:[%s237_s6] sm:$0xff] %v903_v40 }
 0x181   : > { %1397 = shalt.err (!%p1394_p7)
}
 0x182   : > { %s1398_s27 = scalar_lea.hbm %s1821_s25, 128  ;;  %s1402_s22 = scalar_lea.hbm %s1866_s3, 256 }
 0x183   : > { %p1399_p4 = scmp.ne.s32.totalorder %s1821_s25, %s1398_s27  ;;  %p1403_p11 = scmp.lt.s32.totalorder %s1821_s25, %s1866_s3 }
 0x184   : > { %p1404_p10 = scmp.lt.s32.totalorder %s1402_s22, %s1398_s27 }
 0x185   : > { %p1400_p6 = pnand %p1399_p4, %p1592_p13 }
 0x186   : > { %p1405_p1 = por %p1404_p10, %p1403_p11 }
 0x187   : > { %p1401_p9 = pneg %p1400_p6 }
 0x189   : > { %p1406_p8 = pnand %p1405_p1, %p1401_p9 }
 0x18b   : > { %1409 = shalt.err (!%p1406_p8)
}
 0x18c   : > { %1205 = dma.vmem_to_hbm [thread:$0]  (%p1592_p13), %s941_s21, 128, %s1821_s25, %s911_s8  }
 0x18d PF: > { %s952_s30 = sand.u32 1, %s1452_s12   ;;  %p1882_p12 = scmp.ne.s32.totalorder %s1873_s23, 0 }
 0x18e   : > { %p1883_p0 = scmp.ge.s32.totalorder %s1472_s17, 2  ;;  %s953_s5 = scalar_lea.sflag [#allocation5], %s952_s30 }
 0x190   : > { %p1217_p2 = pnand %p1883_p0, %p1882_p12 }
 0x192   : > { %p1218_p3 = pneg %p1217_p2 }
 0x194   : > { %1443 = dma.done.wait (%p1218_p3), %s953_s5, 4096  }
 0x195   : > { %1445 = vsyncadd (%p1218_p3), %s953_s5, 4294963200  ;;  %s962_s6 = scalar_lea.sflag [#allocation10], %s952_s30 }
 0x196   : > { %1447 = dma.done.wait (%p1218_p3), %s962_s6, 128  }
 0x197   : > { %1449 = vsyncadd (%p1218_p3), %s962_s6, 4294967168  ;;  %s24_s17 = sadd.s32 1, %s1472_s17   ;;  %s1884_s12 = smov %s1456_s13 }
 0x198   : > { %p21_p5 = scmp.ge.s32.totalorder %s24_s17, 4   ;;  %s1885_s13 = smov %s1460_s14 }
 0x199   : > { %s1886_s14 = smov %s1601_s19  ;;  %s1887_s15 = smov %s1468_s16 }
 0x19a   : > { %s1888_s16 = smov %s1890_s28  ;;  %23 = sbr.rel (!%p21_p5) target bundleno = 9 (0x9), region = 103 }
 0x19f   :  { %967 = vsyncpa [#allocation4], 1 }
 0x1a0   :  { %969 = vsyncpa [#allocation4 + $0x1], 1 }
 0x1a1   :  { %970 = vsyncpa [#allocation7], 1 }
 0x1a2   :  { %971 = vsyncpa [#allocation5], 1 }
 0x1a3   :  { %973 = vsyncpa [#allocation5 + $0x1], 1 }
 0x1a4   :  { %974 = vsyncpa [#allocation10], 1 }
 0x1a5   :  { %976 = vsyncpa [#allocation10 + $0x1], 1 }

</bundles_post_ra>
